<compile_context>
chip_gen: v6e
topology: v6e:2x2x1
jax: 0.10.0
libtpu: 0.0.40
codegen_flags: <defaults>
</compile_context>

<pallas_src>
import functools

import jax
import jax.numpy as jnp
from jax.experimental import pallas as pl
from jax.experimental.pallas import tpu as pltpu

LN_EPS = 1e-5  # PyTorch nn.LayerNorm default


def _round_up(x, m):
    return (x + m - 1) // m * m


def _pad2(a, rows, cols, dtype):
    a = jnp.asarray(a, dtype)
    return jnp.pad(a, ((0, rows - a.shape[0]), (0, cols - a.shape[1])))


def _layernorm_1pass(x, gamma, beta, n_valid):
    """Single-pass LayerNorm over the last axis (unbiased=False).

    Assumes padded lanes of `x` are exactly zero and gamma/beta are zero in the
    padded lanes, so sums over the padded width equal sums over the true width
    and padded output lanes stay zero.
    """
    n = jnp.float32(n_valid)
    s = jnp.sum(x, axis=-1, keepdims=True)
    s2 = jnp.sum(x * x, axis=-1, keepdims=True)
    mean = s / n
    var = jnp.maximum(s2 / n - mean * mean, 0.0)
    return (x - mean) * jax.lax.rsqrt(var + LN_EPS) * gamma + beta


def _mlp_model_kernel(
    text_ref, mol_ref,
    wt_ref, w1_ref, w2_ref, w3_ref,
    vout_ref, vhid_ref,          # packed (8, nout_p) / (8, nhid_p) vector slabs
    temp_ref,
    text_out_ref, mol_out_ref,
    *, n_valid, compute_dtype,
):
    # Scalar temperature read once per grid step (EUP exp is free-slot work).
    scale = jnp.exp(temp_ref[0])

    # Static row-slices of the packed vector slabs (zero-cost ref views).
    bt = vout_ref[0:1, :]
    b3 = vout_ref[1:2, :]
    g1 = vout_ref[2:3, :]
    be1 = vout_ref[3:4, :]
    g2 = vout_ref[4:5, :]
    be2 = vout_ref[5:6, :]
    b1 = vhid_ref[0:1, :]
    b2 = vhid_ref[1:2, :]

    # ---- text branch: text_x = ln2(text_hidden1(pooler_output)) * exp(temp)
    tx = jnp.dot(text_ref[...], wt_ref[...],
                 preferred_element_type=jnp.float32) + bt
    tx = _layernorm_1pass(tx, g2, be2, n_valid)
    text_out_ref[...] = (tx * scale).astype(text_out_ref.dtype)

    # ---- molecule branch: 3-layer MLP (ReLU) + ln1 + exp(temp) scale
    x = jnp.dot(mol_ref[...], w1_ref[...],
                preferred_element_type=jnp.float32) + b1
    x = jnp.maximum(x, 0.0)
    x = jnp.dot(x.astype(compute_dtype), w2_ref[...],
                preferred_element_type=jnp.float32) + b2
    x = jnp.maximum(x, 0.0)
    x = jnp.dot(x.astype(compute_dtype), w3_ref[...],
                preferred_element_type=jnp.float32) + b3
    x = _layernorm_1pass(x, g1, be1, n_valid)
    mol_out_ref[...] = (x * scale).astype(mol_out_ref.dtype)


def prepare_params(params, compute_dtype=jnp.bfloat16):
    """One-time parameter prep: pad to lane-dense sizes, cast weights to bf16,
    and pack bias/LN vectors into two resident slabs.  Cache the result and
    reuse it across forward calls (this is the expensive HBM traffic)."""
    ninp, nout = params["wt"].shape
    nhid = params["w1"].shape[1]
    ninp_p = _round_up(ninp, 128)
    nout_p = _round_up(nout, 128)
    nhid_p = _round_up(nhid, 128)

    wt = _pad2(params["wt"], ninp_p, nout_p, compute_dtype)
    w1 = _pad2(params["w1"], nout_p, nhid_p, compute_dtype)
    w2 = _pad2(params["w2"], nhid_p, nhid_p, compute_dtype)
    w3 = _pad2(params["w3"], nhid_p, nout_p, compute_dtype)

    # Packed (8, N) f32 slabs: one sublane-group, one DMA each.
    vec_out = jnp.zeros((8, nout_p), jnp.float32)
    vec_out = vec_out.at[0, :nout].set(params["bt"][0])
    vec_out = vec_out.at[1, :nout].set(params["b3"][0])
    vec_out = vec_out.at[2, :nout].set(params["g1"][0])
    vec_out = vec_out.at[3, :nout].set(params["be1"][0])
    vec_out = vec_out.at[4, :nout].set(params["g2"][0])
    vec_out = vec_out.at[5, :nout].set(params["be2"][0])

    vec_hid = jnp.zeros((8, nhid_p), jnp.float32)
    vec_hid = vec_hid.at[0, :nhid].set(params["b1"][0])
    vec_hid = vec_hid.at[1, :nhid].set(params["b2"][0])

    temp = jnp.asarray(params["temp"], jnp.float32).reshape((1,))

    prepared = dict(wt=wt, w1=w1, w2=w2, w3=w3,
                    vec_out=vec_out, vec_hid=vec_hid, temp=temp,
                    ninp=ninp, nout=nout, nhid=nhid,
                    compute_dtype=compute_dtype)
    # Materialize now so the padding/cast cost is paid once, not per forward.
    jax.block_until_ready([wt, w1, w2, w3, vec_out, vec_hid, temp])
    return prepared


def mlp_model_forward(text_pooled, molecule, prepared, *,
                      block_b=256, out_dtype=jnp.bfloat16):
    """text_pooled: (B, ninp) f32 (BERT pooler_output stand-in),
    molecule: (B, nout) f32, prepared: output of prepare_params (cached)."""
    compute_dtype = prepared["compute_dtype"]
    nout = prepared["nout"]
    wt, w1, w2, w3 = prepared["wt"], prepared["w1"], prepared["w2"], prepared["w3"]
    vec_out, vec_hid, temp = prepared["vec_out"], prepared["vec_hid"], prepared["temp"]
    ninp_p, nout_p = wt.shape
    nhid_p = w1.shape[1]

    B = text_pooled.shape[0]
    # Batch tile: multiple of 16 (packed bf16 sublanes), capped at block_b.
    # Tiny B -> single grid step (single core, no weight duplication); large B
    # -> multiple "parallel" steps (second TensorCore on v7x).
    tb = min(block_b, _round_up(B, 16))
    b_p = _round_up(B, tb)
    grid = (b_p // tb,)

    # Per-call padding only for the activations (the data actually changes).
    text_p = _pad2(text_pooled, b_p, ninp_p, compute_dtype)
    mol_p = _pad2(molecule, b_p, nout_p, compute_dtype)

    def batch_tile(cols):
        return pl.BlockSpec((tb, cols), lambda i: (i, 0))

    def resident(shape):
        # Constant block index -> fetched once, stays in VMEM for every step.
        # Single-buffered: no point double-buffering a block that never changes.
        return pl.BlockSpec(shape, lambda i: (0, 0), pipeline_mode=pl.Buffered(1))

    in_specs = [
        batch_tile(ninp_p),            # text (pipelined per batch tile)
        batch_tile(nout_p),            # molecule
        resident((ninp_p, nout_p)),    # wt
        resident((nout_p, nhid_p)),    # w1
        resident((nhid_p, nhid_p)),    # w2
        resident((nhid_p, nout_p)),    # w3
        resident((8, nout_p)),         # packed bt/b3/g1/be1/g2/be2
        resident((8, nhid_p)),         # packed b1/b2
        pl.BlockSpec(memory_space=pltpu.MemorySpace.SMEM),  # temp scalar
    ]
    out_specs = (batch_tile(nout_p), batch_tile(nout_p))

    # VMEM budget: single-buffered resident weights + double-buffered batch
    # tiles / outputs.  Explicit limit so large configs don't trip the 32 MiB
    # scoped default (v7x has 64 MiB physical per TensorCore).
    w_itemsize = jnp.dtype(compute_dtype).itemsize
    out_itemsize = jnp.dtype(out_dtype).itemsize
    resident_bytes = ((wt.size + w1.size + w2.size + w3.size) * w_itemsize
                      + (vec_out.size + vec_hid.size) * 4)
    stream_bytes = (2 * tb * (ninp_p + nout_p) * w_itemsize
                    + 2 * 2 * tb * nout_p * out_itemsize)
    vmem_limit = int(min(max(2 * (resident_bytes + stream_bytes), 32 << 20),
                         64 << 20))

    flops = 2 * b_p * (ninp_p * nout_p + nout_p * nhid_p
                       + nhid_p * nhid_p + nhid_p * nout_p)
    bytes_accessed = int(text_p.size * w_itemsize + mol_p.size * w_itemsize
                         + resident_bytes + 2 * b_p * nout_p * out_itemsize)
    cost = pl.CostEstimate(flops=int(flops),
                           transcendentals=int(2 * b_p + grid[0]),  # rsqrt x2/row + exp/step
                           bytes_accessed=bytes_accessed)

    kernel = functools.partial(_mlp_model_kernel, n_valid=nout,
                               compute_dtype=compute_dtype)

    text_out, mol_out = pl.pallas_call(
        kernel,
        grid=grid,
        out_shape=(
            jax.ShapeDtypeStruct((b_p, nout_p), out_dtype),  # text_x
            jax.ShapeDtypeStruct((b_p, nout_p), out_dtype),  # x (molecule)
        ),
        in_specs=in_specs,
        out_specs=out_specs,
        compiler_params=pltpu.CompilerParams(
            dimension_semantics=("parallel",),
            vmem_limit_bytes=vmem_limit),
        cost_estimate=cost,
    )(text_p, mol_p, wt, w1, w2, w3, vec_out, vec_hid, temp)

    # Strip batch and lane padding.
    return text_out[:B, :nout], mol_out[:B, :nout]


def make_params(key, ninp, nout, nhid):
    """Deterministic init mimicking PyTorch nn.Linear default (U(-1/sqrt(in), +))."""
    ks = jax.random.split(key, 8)

    def linear(kw, kb, fan_in, fan_out):
        bound = 1.0 / jnp.sqrt(fan_in)
        w = jax.random.uniform(kw, (fan_in, fan_out), jnp.float32, -bound, bound)
        b = jax.random.uniform(kb, (1, fan_out), jnp.float32, -bound, bound)
        return w, b

    wt, bt = linear(ks[0], ks[1], ninp, nout)   # text_hidden1
    w1, b1 = linear(ks[2], ks[3], nout, nhid)   # mol_hidden1
    w2, b2 = linear(ks[4], ks[5], nhid, nhid)   # mol_hidden2
    w3, b3 = linear(ks[6], ks[7], nhid, nout)   # mol_hidden3

    return dict(
        wt=wt, bt=bt, w1=w1, b1=b1, w2=w2, b2=b2, w3=w3, b3=b3,
        g1=jnp.ones((1, nout), jnp.float32), be1=jnp.zeros((1, nout), jnp.float32),
        g2=jnp.ones((1, nout), jnp.float32), be2=jnp.zeros((1, nout), jnp.float32),
        temp=jnp.array([0.07], jnp.float32),
    )


def ref_forward(text_pooled, molecule, p, compute_dtype=jnp.bfloat16):
    """Pure-JAX reference with the same bf16-MXU / f32-elementwise math."""
    scale = jnp.exp(p["temp"][0])

    def ln(x, g, b):
        mean = jnp.mean(x, axis=-1, keepdims=True)
        var = jnp.mean((x - mean) ** 2, axis=-1, keepdims=True)
        return (x - mean) * jax.lax.rsqrt(var + LN_EPS) * g + b

    def dot(x, w):
        return jnp.dot(x.astype(compute_dtype), w.astype(compute_dtype),
                       preferred_element_type=jnp.float32)

    tx = dot(text_pooled, p["wt"]) + p["bt"]
    tx = ln(tx, p["g2"], p["be2"]) * scale

    x = jnp.maximum(dot(molecule, p["w1"]) + p["b1"], 0.0)
    x = jnp.maximum(dot(x, p["w2"]) + p["b2"], 0.0)
    x = dot(x, p["w3"]) + p["b3"]
    x = ln(x, p["g1"], p["be1"]) * scale
    return tx, x


if __name__ == "__main__":
    B, ninp, nout, nhid = 2, 32, 16, 32

    key = jax.random.PRNGKey(0)
    k_text, k_mol, k_params = jax.random.split(key, 3)

    # Stand-in for BERT pooler_output (see TODO above) and the molecule features.
    text_pooled = jax.random.normal(k_text, (B, ninp), jnp.float32)
    molecule = jax.random.normal(k_mol, (B, nout), jnp.float32)
    params = make_params(k_params, ninp, nout, nhid)

    # One-time parameter prep (cache and reuse across forward calls).
    prepared = prepare_params(params)

    text_x, mol_x = mlp_model_forward(text_pooled, molecule, prepared)
    jax.block_until_ready((text_x, mol_x))

    assert text_x.shape == (B, nout) and mol_x.shape == (B, nout)

    rt, rm = ref_forward(text_pooled, molecule, params)
    tx32 = text_x.astype(jnp.float32)
    mx32 = mol_x.astype(jnp.float32)
    # Outputs are bf16 now -> compare with bf16-appropriate tolerance.
    assert jnp.allclose(tx32, rt, atol=1e-2, rtol=1e-2), \
        f"text mismatch: max abs err {jnp.max(jnp.abs(tx32 - rt))}"
    assert jnp.allclose(mx32, rm, atol=1e-2, rtol=1e-2), \
        f"mol mismatch: max abs err {jnp.max(jnp.abs(mx32 - rm))}"

    print("KERNEL_OK")
</pallas_src>

<mosaic_0001>
module attributes {stable_mosaic.version = 11 : i64} {
  func.func @_mlp_model_kernel(%arg0: i32, %arg1: memref<16x128xbf16, #tpu.memory_space<vmem>>, %arg2: memref<16x128xbf16, #tpu.memory_space<vmem>>, %arg3: memref<128x128xbf16, #tpu.memory_space<vmem>>, %arg4: memref<128x128xbf16, #tpu.memory_space<vmem>>, %arg5: memref<128x128xbf16, #tpu.memory_space<vmem>>, %arg6: memref<128x128xbf16, #tpu.memory_space<vmem>>, %arg7: memref<8x128xf32, #tpu.memory_space<vmem>>, %arg8: memref<8x128xf32, #tpu.memory_space<vmem>>, %arg9: memref<1xf32, #tpu.memory_space<smem>>, %arg10: memref<16x128xbf16, #tpu.memory_space<vmem>>, %arg11: memref<16x128xbf16, #tpu.memory_space<vmem>>) attributes {dimension_semantics = [#tpu.dimension_semantics<parallel>], iteration_bounds = array<i64: 1>, scalar_prefetch = 0 : i64, scratch_operands = 0 : i64, tpu.core_type = #tpu.core_type<tc>, window_params = [{transform_indices = @transform_0, window_bounds = array<i64: 16, 128>}, {transform_indices = @transform_1, window_bounds = array<i64: 16, 128>}, {pipeline_mode = #tpu.pipeline_mode<synchronous>, transform_indices = @transform_2, window_bounds = array<i64: 128, 128>}, {pipeline_mode = #tpu.pipeline_mode<synchronous>, transform_indices = @transform_3, window_bounds = array<i64: 128, 128>}, {pipeline_mode = #tpu.pipeline_mode<synchronous>, transform_indices = @transform_4, window_bounds = array<i64: 128, 128>}, {pipeline_mode = #tpu.pipeline_mode<synchronous>, transform_indices = @transform_5, window_bounds = array<i64: 128, 128>}, {pipeline_mode = #tpu.pipeline_mode<synchronous>, transform_indices = @transform_6, window_bounds = array<i64: 8, 128>}, {pipeline_mode = #tpu.pipeline_mode<synchronous>, transform_indices = @transform_7, window_bounds = array<i64: 8, 128>}, {transform_indices = @transform_8, window_bounds = array<i64: 1>}, {transform_indices = @transform_9, window_bounds = array<i64: 16, 128>}, {transform_indices = @transform_10, window_bounds = array<i64: 16, 128>}]} {
    %c0 = arith.constant 0 : index
    %0 = memref.load %arg9[%c0] : memref<1xf32, #tpu.memory_space<smem>>
    %1 = math.exp %0 : f32
    %c0_0 = arith.constant 0 : index
    %c0_1 = arith.constant 0 : index
    %2 = vector.load %arg7[%c0_0, %c0_1] : memref<8x128xf32, #tpu.memory_space<vmem>>, vector<1x128xf32>
    %c1 = arith.constant 1 : index
    %c0_2 = arith.constant 0 : index
    %3 = vector.load %arg7[%c1, %c0_2] : memref<8x128xf32, #tpu.memory_space<vmem>>, vector<1x128xf32>
    %c2 = arith.constant 2 : index
    %c0_3 = arith.constant 0 : index
    %4 = vector.load %arg7[%c2, %c0_3] : memref<8x128xf32, #tpu.memory_space<vmem>>, vector<1x128xf32>
    %c3 = arith.constant 3 : index
    %c0_4 = arith.constant 0 : index
    %5 = vector.load %arg7[%c3, %c0_4] : memref<8x128xf32, #tpu.memory_space<vmem>>, vector<1x128xf32>
    %c4 = arith.constant 4 : index
    %c0_5 = arith.constant 0 : index
    %6 = vector.load %arg7[%c4, %c0_5] : memref<8x128xf32, #tpu.memory_space<vmem>>, vector<1x128xf32>
    %c5 = arith.constant 5 : index
    %c0_6 = arith.constant 0 : index
    %7 = vector.load %arg7[%c5, %c0_6] : memref<8x128xf32, #tpu.memory_space<vmem>>, vector<1x128xf32>
    %c0_7 = arith.constant 0 : index
    %c0_8 = arith.constant 0 : index
    %8 = vector.load %arg8[%c0_7, %c0_8] : memref<8x128xf32, #tpu.memory_space<vmem>>, vector<1x128xf32>
    %c1_9 = arith.constant 1 : index
    %c0_10 = arith.constant 0 : index
    %9 = vector.load %arg8[%c1_9, %c0_10] : memref<8x128xf32, #tpu.memory_space<vmem>>, vector<1x128xf32>
    %c0_11 = arith.constant 0 : index
    %c0_12 = arith.constant 0 : index
    %10 = vector.load %arg1[%c0_11, %c0_12] : memref<16x128xbf16, #tpu.memory_space<vmem>>, vector<16x128xbf16>
    %c0_13 = arith.constant 0 : index
    %c0_14 = arith.constant 0 : index
    %11 = vector.load %arg3[%c0_13, %c0_14] : memref<128x128xbf16, #tpu.memory_space<vmem>>, vector<128x128xbf16>
    %cst = arith.constant dense<0.000000e+00> : vector<16x128xf32>
    %12 = tpu.matmul %10, %11, %cst {dimension_numbers = #tpu.dot_dimension_numbers<[1], [0], [0], [1], [0, 0, 1, 1], [], []>} : vector<16x128xbf16>, vector<128x128xbf16>, vector<16x128xf32> -> vector<16x128xf32>
    %13 = vector.broadcast %2 : vector<1x128xf32> to vector<16x128xf32>
    %14 = arith.addf %12, %13 : vector<16x128xf32>
    %cst_15 = arith.constant dense<0.000000e+00> : vector<16xf32>
    %15 = vector.multi_reduction <add>, %14, %cst_15 [1] : vector<16x128xf32> to vector<16xf32>
    %16 = vector.shape_cast %15 : vector<16xf32> to vector<16x1xf32>
    %17 = arith.mulf %14, %14 : vector<16x128xf32>
    %cst_16 = arith.constant dense<0.000000e+00> : vector<16xf32>
    %18 = vector.multi_reduction <add>, %17, %cst_16 [1] : vector<16x128xf32> to vector<16xf32>
    %19 = vector.shape_cast %18 : vector<16xf32> to vector<16x1xf32>
    %cst_17 = arith.constant 1.600000e+01 : f32
    %20 = vector.broadcast %cst_17 : f32 to vector<16x1xf32>
    %21 = arith.divf %16, %20 : vector<16x1xf32>
    %cst_18 = arith.constant 1.600000e+01 : f32
    %22 = vector.broadcast %cst_18 : f32 to vector<16x1xf32>
    %23 = arith.divf %19, %22 : vector<16x1xf32>
    %24 = arith.mulf %21, %21 : vector<16x1xf32>
    %25 = arith.subf %23, %24 : vector<16x1xf32>
    %cst_19 = arith.constant 0.000000e+00 : f32
    %26 = vector.broadcast %cst_19 : f32 to vector<16x1xf32>
    %27 = arith.maximumf %25, %26 : vector<16x1xf32>
    %28 = vector.broadcast %21 : vector<16x1xf32> to vector<16x128xf32>
    %29 = arith.subf %14, %28 : vector<16x128xf32>
    %cst_20 = arith.constant 9.99999974E-6 : f32
    %30 = vector.broadcast %cst_20 : f32 to vector<16x1xf32>
    %31 = arith.addf %27, %30 : vector<16x1xf32>
    %32 = math.rsqrt %31 : vector<16x1xf32>
    %33 = vector.broadcast %32 : vector<16x1xf32> to vector<16x128xf32>
    %34 = arith.mulf %29, %33 : vector<16x128xf32>
    %35 = vector.broadcast %6 : vector<1x128xf32> to vector<16x128xf32>
    %36 = arith.mulf %34, %35 : vector<16x128xf32>
    %37 = vector.broadcast %7 : vector<1x128xf32> to vector<16x128xf32>
    %38 = arith.addf %36, %37 : vector<16x128xf32>
    %39 = vector.broadcast %1 : f32 to vector<16x128xf32>
    %40 = arith.mulf %38, %39 : vector<16x128xf32>
    %41 = arith.truncf %40 : vector<16x128xf32> to vector<16x128xbf16>
    %c0_21 = arith.constant 0 : index
    %c0_22 = arith.constant 0 : index
    %42 = vector.load %arg10[%c0_21, %c0_22] : memref<16x128xbf16, #tpu.memory_space<vmem>>, vector<16x128xbf16>
    tpu.vector_store %arg10[%c0_21, %c0_22], %41 {strides = array<i32>} : memref<16x128xbf16, #tpu.memory_space<vmem>>, vector<16x128xbf16>,
    %c0_23 = arith.constant 0 : index
    %c0_24 = arith.constant 0 : index
    %43 = vector.load %arg2[%c0_23, %c0_24] : memref<16x128xbf16, #tpu.memory_space<vmem>>, vector<16x128xbf16>
    %c0_25 = arith.constant 0 : index
    %c0_26 = arith.constant 0 : index
    %44 = vector.load %arg4[%c0_25, %c0_26] : memref<128x128xbf16, #tpu.memory_space<vmem>>, vector<128x128xbf16>
    %cst_27 = arith.constant dense<0.000000e+00> : vector<16x128xf32>
    %45 = tpu.matmul %43, %44, %cst_27 {dimension_numbers = #tpu.dot_dimension_numbers<[1], [0], [0], [1], [0, 0, 1, 1], [], []>} : vector<16x128xbf16>, vector<128x128xbf16>, vector<16x128xf32> -> vector<16x128xf32>
    %46 = vector.broadcast %8 : vector<1x128xf32> to vector<16x128xf32>
    %47 = arith.addf %45, %46 : vector<16x128xf32>
    %cst_28 = arith.constant 0.000000e+00 : f32
    %48 = vector.broadcast %cst_28 : f32 to vector<16x128xf32>
    %49 = arith.maximumf %47, %48 : vector<16x128xf32>
    %50 = arith.truncf %49 : vector<16x128xf32> to vector<16x128xbf16>
    %c0_29 = arith.constant 0 : index
    %c0_30 = arith.constant 0 : index
    %51 = vector.load %arg5[%c0_29, %c0_30] : memref<128x128xbf16, #tpu.memory_space<vmem>>, vector<128x128xbf16>
    %cst_31 = arith.constant dense<0.000000e+00> : vector<16x128xf32>
    %52 = tpu.matmul %50, %51, %cst_31 {dimension_numbers = #tpu.dot_dimension_numbers<[1], [0], [0], [1], [0, 0, 1, 1], [], []>} : vector<16x128xbf16>, vector<128x128xbf16>, vector<16x128xf32> -> vector<16x128xf32>
    %53 = vector.broadcast %9 : vector<1x128xf32> to vector<16x128xf32>
    %54 = arith.addf %52, %53 : vector<16x128xf32>
    %cst_32 = arith.constant 0.000000e+00 : f32
    %55 = vector.broadcast %cst_32 : f32 to vector<16x128xf32>
    %56 = arith.maximumf %54, %55 : vector<16x128xf32>
    %57 = arith.truncf %56 : vector<16x128xf32> to vector<16x128xbf16>
    %c0_33 = arith.constant 0 : index
    %c0_34 = arith.constant 0 : index
    %58 = vector.load %arg6[%c0_33, %c0_34] : memref<128x128xbf16, #tpu.memory_space<vmem>>, vector<128x128xbf16>
    %cst_35 = arith.constant dense<0.000000e+00> : vector<16x128xf32>
    %59 = tpu.matmul %57, %58, %cst_35 {dimension_numbers = #tpu.dot_dimension_numbers<[1], [0], [0], [1], [0, 0, 1, 1], [], []>} : vector<16x128xbf16>, vector<128x128xbf16>, vector<16x128xf32> -> vector<16x128xf32>
    %60 = vector.broadcast %3 : vector<1x128xf32> to vector<16x128xf32>
    %61 = arith.addf %59, %60 : vector<16x128xf32>
    %cst_36 = arith.constant dense<0.000000e+00> : vector<16xf32>
    %62 = vector.multi_reduction <add>, %61, %cst_36 [1] : vector<16x128xf32> to vector<16xf32>
    %63 = vector.shape_cast %62 : vector<16xf32> to vector<16x1xf32>
    %64 = arith.mulf %61, %61 : vector<16x128xf32>
    %cst_37 = arith.constant dense<0.000000e+00> : vector<16xf32>
    %65 = vector.multi_reduction <add>, %64, %cst_37 [1] : vector<16x128xf32> to vector<16xf32>
    %66 = vector.shape_cast %65 : vector<16xf32> to vector<16x1xf32>
    %cst_38 = arith.constant 1.600000e+01 : f32
    %67 = vector.broadcast %cst_38 : f32 to vector<16x1xf32>
    %68 = arith.divf %63, %67 : vector<16x1xf32>
    %cst_39 = arith.constant 1.600000e+01 : f32
    %69 = vector.broadcast %cst_39 : f32 to vector<16x1xf32>
    %70 = arith.divf %66, %69 : vector<16x1xf32>
    %71 = arith.mulf %68, %68 : vector<16x1xf32>
    %72 = arith.subf %70, %71 : vector<16x1xf32>
    %cst_40 = arith.constant 0.000000e+00 : f32
    %73 = vector.broadcast %cst_40 : f32 to vector<16x1xf32>
    %74 = arith.maximumf %72, %73 : vector<16x1xf32>
    %75 = vector.broadcast %68 : vector<16x1xf32> to vector<16x128xf32>
    %76 = arith.subf %61, %75 : vector<16x128xf32>
    %cst_41 = arith.constant 9.99999974E-6 : f32
    %77 = vector.broadcast %cst_41 : f32 to vector<16x1xf32>
    %78 = arith.addf %74, %77 : vector<16x1xf32>
    %79 = math.rsqrt %78 : vector<16x1xf32>
    %80 = vector.broadcast %79 : vector<16x1xf32> to vector<16x128xf32>
    %81 = arith.mulf %76, %80 : vector<16x128xf32>
    %82 = vector.broadcast %4 : vector<1x128xf32> to vector<16x128xf32>
    %83 = arith.mulf %81, %82 : vector<16x128xf32>
    %84 = vector.broadcast %5 : vector<1x128xf32> to vector<16x128xf32>
    %85 = arith.addf %83, %84 : vector<16x128xf32>
    %86 = vector.broadcast %1 : f32 to vector<16x128xf32>
    %87 = arith.mulf %85, %86 : vector<16x128xf32>
    %88 = arith.truncf %87 : vector<16x128xf32> to vector<16x128xbf16>
    %c0_42 = arith.constant 0 : index
    %c0_43 = arith.constant 0 : index
    %89 = vector.load %arg11[%c0_42, %c0_43] : memref<16x128xbf16, #tpu.memory_space<vmem>>, vector<16x128xbf16>
    tpu.vector_store %arg11[%c0_42, %c0_43], %88 {strides = array<i32>} : memref<16x128xbf16, #tpu.memory_space<vmem>>, vector<16x128xbf16>,
    return
  }
  func.func @transform_0(%arg0: i32) -> (i32, i32) {
    %c0_i32 = arith.constant 0 : i32
    %c0_i32_0 = arith.constant 0 : i32
    return %arg0, %c0_i32 : i32, i32
  }
  func.func @transform_1(%arg0: i32) -> (i32, i32) {
    %c0_i32 = arith.constant 0 : i32
    %c0_i32_0 = arith.constant 0 : i32
    return %arg0, %c0_i32 : i32, i32
  }
  func.func @transform_2(%arg0: i32) -> (i32, i32) {
    %c0_i32 = arith.constant 0 : i32
    %c0_i32_0 = arith.constant 0 : i32
    %c0_i32_1 = arith.constant 0 : i32
    return %c0_i32, %c0_i32_0 : i32, i32
  }
  func.func @transform_3(%arg0: i32) -> (i32, i32) {
    %c0_i32 = arith.constant 0 : i32
    %c0_i32_0 = arith.constant 0 : i32
    %c0_i32_1 = arith.constant 0 : i32
    return %c0_i32, %c0_i32_0 : i32, i32
  }
  func.func @transform_4(%arg0: i32) -> (i32, i32) {
    %c0_i32 = arith.constant 0 : i32
    %c0_i32_0 = arith.constant 0 : i32
    %c0_i32_1 = arith.constant 0 : i32
    return %c0_i32, %c0_i32_0 : i32, i32
  }
  func.func @transform_5(%arg0: i32) -> (i32, i32) {
    %c0_i32 = arith.constant 0 : i32
    %c0_i32_0 = arith.constant 0 : i32
    %c0_i32_1 = arith.constant 0 : i32
    return %c0_i32, %c0_i32_0 : i32, i32
  }
  func.func @transform_6(%arg0: i32) -> (i32, i32) {
    %c0_i32 = arith.constant 0 : i32
    %c0_i32_0 = arith.constant 0 : i32
    %c0_i32_1 = arith.constant 0 : i32
    return %c0_i32, %c0_i32_0 : i32, i32
  }
  func.func @transform_7(%arg0: i32) -> (i32, i32) {
    %c0_i32 = arith.constant 0 : i32
    %c0_i32_0 = arith.constant 0 : i32
    %c0_i32_1 = arith.constant 0 : i32
    return %c0_i32, %c0_i32_0 : i32, i32
  }
  func.func @transform_8(%arg0: i32) -> i32 {
    %c0_i32 = arith.constant 0 : i32
    %c0_i32_0 = arith.constant 0 : i32
    return %c0_i32 : i32
  }
  func.func @transform_9(%arg0: i32) -> (i32, i32) {
    %c0_i32 = arith.constant 0 : i32
    %c0_i32_0 = arith.constant 0 : i32
    return %arg0, %c0_i32 : i32, i32
  }
  func.func @transform_10(%arg0: i32) -> (i32, i32) {
    %c0_i32 = arith.constant 0 : i32
    %c0_i32_0 = arith.constant 0 : i32
    return %arg0, %c0_i32 : i32, i32
  }
}

</mosaic_0001>

<bundles_post_ra>
// kernel: tpu_custom_call.1
= control target key start
LH: loop header
LB: loop body
LE: loop exit
PB: predicated region body
PF: predicated region fallthrough
CT: control target
= control target key end

     0   :  { %17 = vsyncpa [#allocation4], 0  ;;  %s1363_s0 = inlined_call_operand.hbm [shape: bf16[16,128], index: 0, kind: input, shape index: {}]   ;;  %s1364_s1 = inlined_call_operand.hbm [shape: bf16[16,128], index: 1, kind: input, shape index: {}]   ;;  %s1365_s2 = inlined_call_operand.hbm [shape: bf16[128,128], index: 2, kind: input, shape index: {}]   ;;  %s1366_s3 = inlined_call_operand.hbm [shape: bf16[128,128], index: 3, kind: input, shape index: {}]   ;;  %s1367_s4 = inlined_call_operand.hbm [shape: bf16[128,128], index: 4, kind: input, shape index: {}]   ;;  %s1368_s5 = inlined_call_operand.hbm [shape: bf16[128,128], index: 5, kind: input, shape index: {}]   ;;  %s1369_s6 = inlined_call_operand.vmem [shape: f32[8,128], index: 6, kind: input, shape index: {}]   ;;  %s1370_s7 = inlined_call_operand.hbm [shape: f32[8,128], index: 7, kind: input, shape index: {}]   ;;  %s1371_s8 = inlined_call_operand.<no memory space> [shape: f32[1], index: 8, kind: input, shape index: {}]   ;;  %s1372_s9 = inlined_call_operand.hbm [shape: bf16[16,128], index: 9, kind: output, shape index: {0}]   ;;  %s1373_s10 = inlined_call_operand.hbm [shape: bf16[16,128], index: 10, kind: output, shape index: {1}]  }
   0x1   :  { %18 = vsyncpa [#allocation7], 0 }
   0x2   :  { %19 = vsyncpa [#allocation10], 0 }
   0x3   :  { %20 = vsyncpa [#allocation13], 0 }
   0x4   :  { %21 = vsyncpa [#allocation5], 0 }
   0x5   :  { %22 = vsyncpa [#allocation17], 0  ;;  %s1171_s13 = smov [#allocation6]   ;;  %s1172_s15 = smov [#allocation9]  }
   0x6   :  { %s40_s14 = sshll.u32 %s1171_s13, 4  ;;  %s64_s16 = sshll.u32 %s1172_s15, 4  ;;  %s41_s14 = int_to_ptr.vmem [resolvable:$true] %s40_s14  ;;  %s65_s16 = int_to_ptr.vmem [resolvable:$true] %s64_s16 }
   0x7   :  { %s987_s17 = scalar_lea.vmem %s41_s14, 128  ;;  %p992_p1 = scmp.lt.s32.totalorder %s41_s14, %s41_s14 }
   0x8   :  { %p988_p0 = scmp.ne.s32.totalorder %s41_s14, %s987_s17  ;;  %p993_p2 = scmp.lt.s32.totalorder %s987_s17, %s987_s17 }
   0xa   :  { %p994_p3 = por %p993_p2, %p992_p1 }
   0xc   :  { %p995_p4 = pnand %p994_p3, %p988_p0 }
   0xe   :  { %998 = shalt.err (!%p995_p4)
}
   0xf   :  { %s1173_s18 = smov 64   ;;  %s1174_s19 = smov 4  }
  0x10   :  { %46 = dma.hbm_to_vmem [thread:$0]  %s1364_s1, 128, %s41_s14, [#allocation7], %s1173_s18, %s1173_s18, %s1174_s19  }
  0x11   :  { %s1007_s22 = scalar_lea.vmem %s65_s16, 1024  ;;  %p1012_p6 = scmp.lt.s32.totalorder %s65_s16, %s65_s16 }
  0x12   :  { %p1008_p5 = scmp.ne.s32.totalorder %s65_s16, %s1007_s22  ;;  %p1013_p7 = scmp.lt.s32.totalorder %s1007_s22, %s1007_s22 }
  0x14   :  { %p1014_p8 = por %p1013_p7, %p1012_p6 }
  0x16   :  { %p1015_p9 = pnand %p1014_p8, %p1008_p5 }
  0x18   :  { %1018 = shalt.err (!%p1015_p9)
}
  0x19   :  { %70 = dma.hbm_to_vmem [thread:$0]  %s1366_s3, 1024, %s65_s16, [#allocation10], %s1173_s18, %s1173_s18, %s1174_s19  }
  0x1a   :  { %s1175_s25 = smov [#allocation12]   ;;  %s1176_s27 = smov [#allocation3]  }
  0x1b   :  { %s88_s26 = sshll.u32 %s1175_s25, 4  ;;  %s28_s28 = sshll.u32 %s1176_s27, 4  ;;  %s89_s26 = int_to_ptr.vmem [resolvable:$true] %s88_s26  ;;  %s29_s28 = int_to_ptr.vmem [resolvable:$true] %s28_s28 }
  0x1c   :  { %s1027_s1 = scalar_lea.vmem %s89_s26, 1024  ;;  %p1032_p11 = scmp.lt.s32.totalorder %s89_s26, %s89_s26 }
  0x1d   :  { %p1028_p10 = scmp.ne.s32.totalorder %s89_s26, %s1027_s1  ;;  %p1033_p12 = scmp.lt.s32.totalorder %s1027_s1, %s1027_s1 }
  0x1f   :  { %p1034_p13 = por %p1033_p12, %p1032_p11 }
  0x21   :  { %p1035_p0 = pnand %p1034_p13, %p1028_p10 }
  0x23   :  { %1038 = shalt.err (!%p1035_p0)
}
  0x24   :  { %94 = dma.hbm_to_vmem [thread:$0]  %s1368_s5, 1024, %s89_s26, [#allocation13], %s1173_s18, %s1173_s18, %s1174_s19  }
  0x25   :  { %s1047_s3 = scalar_lea.vmem %s29_s28, 128  ;;  %p1052_p2 = scmp.lt.s32.totalorder %s29_s28, %s29_s28 }
  0x26   :  { %p1048_p1 = scmp.ne.s32.totalorder %s29_s28, %s1047_s3  ;;  %p1053_p3 = scmp.lt.s32.totalorder %s1047_s3, %s1047_s3 }
  0x28   :  { %p1054_p4 = por %p1053_p3, %p1052_p2 }
  0x2a   :  { %p1055_p5 = pnand %p1054_p4, %p1048_p1 }
  0x2c   :  { %1058 = shalt.err (!%p1055_p5)
}
  0x2d   :  { %34 = dma.hbm_to_vmem [thread:$0]  %s1363_s0, 128, %s29_s28, [#allocation4], %s1173_s18, %s1173_s18, %s1174_s19  }
  0x2e   :  { %s1177_s13 = smov [#allocation8]   ;;  %s1178_s15 = smov [#allocation11]  }
  0x2f   :  { %s52_s14 = sshll.u32 %s1177_s13, 4  ;;  %s76_s16 = sshll.u32 %s1178_s15, 4  ;;  %s53_s14 = int_to_ptr.vmem [resolvable:$true] %s52_s14  ;;  %s77_s16 = int_to_ptr.vmem [resolvable:$true] %s76_s16 }
  0x30   :  { %s1067_s5 = scalar_lea.vmem %s53_s14, 1024  ;;  %p1072_p7 = scmp.lt.s32.totalorder %s53_s14, %s53_s14 }
  0x31   :  { %p1068_p6 = scmp.ne.s32.totalorder %s53_s14, %s1067_s5  ;;  %p1073_p8 = scmp.lt.s32.totalorder %s1067_s5, %s1067_s5 }
  0x33   :  { %p1074_p9 = por %p1073_p8, %p1072_p7 }
  0x35   :  { %p1075_p10 = pnand %p1074_p9, %p1068_p6 }
  0x37   :  { %1078 = shalt.err (!%p1075_p10)
}
  0x38   :  { %58 = dma.hbm_to_vmem [thread:$0]  %s1365_s2, 1024, %s53_s14, [#allocation7], %s1173_s18, %s1173_s18, %s1174_s19  }
  0x39   :  { %s1087_s0 = scalar_lea.vmem %s77_s16, 1024  ;;  %p1092_p12 = scmp.lt.s32.totalorder %s77_s16, %s77_s16 }
  0x3a   :  { %p1088_p11 = scmp.ne.s32.totalorder %s77_s16, %s1087_s0  ;;  %p1093_p13 = scmp.lt.s32.totalorder %s1087_s0, %s1087_s0 }
  0x3c   :  { %p1094_p0 = por %p1093_p13, %p1092_p12 }
  0x3e   :  { %p1095_p1 = pnand %p1094_p0, %p1088_p11 }
  0x40   :  { %1098 = shalt.err (!%p1095_p1)
}
  0x41   :  { %82 = dma.hbm_to_vmem [thread:$0]  %s1367_s4, 1024, %s77_s16, [#allocation10], %s1173_s18, %s1173_s18, %s1174_s19  }
  0x42   :  { %s1179_s23 = smov [#allocation14]  }
  0x43   :  { %s103_s24 = sshll.u32 %s1179_s23, 4  ;;  %s104_s24 = int_to_ptr.vmem [resolvable:$true] %s103_s24 }
  0x44   :  { %s1107_s25 = scalar_lea.vmem %s104_s24, 128  ;;  %p1112_p3 = scmp.lt.s32.totalorder %s104_s24, %s104_s24 }
  0x45   :  { %p1108_p2 = scmp.ne.s32.totalorder %s104_s24, %s1107_s25  ;;  %p1113_p4 = scmp.lt.s32.totalorder %s1107_s25, %s1107_s25 }
  0x47   :  { %p1114_p5 = por %p1113_p4, %p1112_p3 }
  0x49   :  { %p1115_p6 = pnand %p1114_p5, %p1108_p2 }
  0x4b   :  { %1118 = shalt.err (!%p1115_p6)
}
  0x4c   :  { %106 = dma.hbm_to_vmem [thread:$0]  %s1370_s7, 128, %s104_s24, [#allocation13]  }
  0x4d   :  { %1159 = dma.done.wait [#allocation4], 128  }
  0x4e   :  { %1160 = vsyncadd [#allocation4], 4294967168 }
  0x4f   :  { %1161 = dma.done.wait [#allocation7], 1152  }
  0x50   :  { %1162 = vsyncadd [#allocation7], 4294966144 }
  0x51   :  { %1163 = dma.done.wait [#allocation10], 2048  }
  0x52   :  { %1164 = vsyncadd [#allocation10], 4294965248 }
  0x53   :  { %1165 = dma.done.wait [#allocation13], 1152  }
  0x54   :  { %1166 = vsyncadd [#allocation13], 4294966144  ;;  %v1180_v0 = vmov 0.0   ;;  %vm1181_vm0 = vmmov 0   ;;  %v935_v1 = vld [vmem:[#allocation9 + $0x38] sm:$0xff]   ;;  %v937_v3 = vld [vmem:[#allocation9 + $0x30] sm:$0xff]   ;;  %v132_v27 = vstv %s1371_s8 }
  0x55   :  { %860 = vmatprep.subr.bf16.mxu1 %v1180_v0  ;;  %840 = vmatprep.subr.bf16.mxu0 %v1180_v0  ;;  %v936_v2 = vld [vmem:[#allocation8 + $0x38] sm:$0xff]   ;;  %v938_v4 = vld [vmem:[#allocation8 + $0x30] sm:$0xff]   ;;  %v939_v5 = vld [vmem:[#allocation9 + $0x28] sm:$0xff]   ;;  %v133_v28 = vmul.f32 1.442695, %v132_v27  ;;  %s1182_s13 = smov [#allocation15]  }
  0x56   :  { %876 = vmatprep.mubr.msk.bf16.mxu1 %vm1181_vm0, %v1180_v0  ;;  %856 = vmatprep.mubr.msk.bf16.mxu0 %vm1181_vm0, %v1180_v0  ;;  %v940_v6 = vld [vmem:[#allocation8 + $0x28] sm:$0xff]   ;;  %v941_v7 = vld [vmem:[#allocation9 + $0x20] sm:$0xff]   ;;  %v943_v9 = vld [vmem:[#allocation9 + $0x18] sm:$0xff]   ;;  %s713_s14 = sshll.u32 %s1182_s13, 4  ;;  %s714_s14 = int_to_ptr.vmem [resolvable:$true] %s713_s14 }
  0x57   :  { %861 = vmatpush3.bf16.msra.mxu1 %v935_v1  ;;  %841 = vmatpush3.bf16.msra.mxu0 %v936_v2  ;;  %v942_v8 = vld [vmem:[#allocation8 + $0x20] sm:$0xff]   ;;  %v944_v10 = vld [vmem:[#allocation8 + $0x18] sm:$0xff]   ;;  %v945_v11 = vld [vmem:[#allocation9 + $0x10] sm:$0xff]   ;;  %969 = vpow2.f32 %v133_v28  ;;  %s1119_s15 = scalar_lea.vmem %s714_s14, 128  ;;  %p1124_p8 = scmp.lt.s32.totalorder %s714_s14, %s714_s14 }
  0x58   :  { %862 = vmatprep.subr.bf16.mxu1 %v1180_v0  ;;  %842 = vmatprep.subr.bf16.mxu0 %v1180_v0  ;;  %v946_v12 = vld [vmem:[#allocation8 + $0x10] sm:$0xff]   ;;  %v947_v13 = vld [vmem:[#allocation9 + $0x8] sm:$0xff]   ;;  %v949_v15 = vld [vmem:[#allocation9] sm:$0xff]   ;;  %p1120_p7 = scmp.ne.s32.totalorder %s714_s14, %s1119_s15  ;;  %p1125_p9 = scmp.lt.s32.totalorder %s1119_s15, %s1119_s15 }
  0x59   :  { %v948_v14 = vld [vmem:[#allocation8 + $0x8] sm:$0xff]   ;;  %v951_v16 = vld [vmem:[#allocation8] sm:$0xff]   ;;  %v950_v17 = vld [vmem:[#allocation6] sm:$0xff]  }
  0x5a   :  { %v952_v18 = vld [vmem:[#allocation3] sm:$0xff]   ;;  %v953_v19 = vld [vmem:[#allocation11 + $0x38] sm:$0xff]   ;;  %v955_v21 = vld [vmem:[#allocation11 + $0x28] sm:$0xff]   ;;  %p1126_p10 = por %p1125_p9, %p1124_p8 }
  0x5b   :  { %863 = vmatpush3.bf16.msra.mxu1 %v937_v3  ;;  %843 = vmatpush3.bf16.msra.mxu0 %v938_v4  ;;  %v954_v20 = vld [vmem:[#allocation11 + $0x30] sm:$0xff]   ;;  %v956_v22 = vld [vmem:[#allocation11 + $0x20] sm:$0xff]   ;;  %v957_v23 = vld [vmem:[#allocation11 + $0x18] sm:$0xff]  }
  0x5c   :  { %864 = vmatprep.subr.bf16.mxu1 %v1180_v0  ;;  %844 = vmatprep.subr.bf16.mxu0 %v1180_v0  ;;  %v958_v24 = vld [vmem:[#allocation11 + $0x10] sm:$0xff]   ;;  %v959_v25 = vld [vmem:[#allocation11 + $0x8] sm:$0xff]   ;;  %v960_v26 = vld [vmem:[#allocation11] sm:$0xff]   ;;  %p1127_p11 = pnand %p1126_p10, %p1120_p7 }
  0x5d   :  { %v744_v30 = vld [vmem:[%s1369_s6] ss:$0 sm:$0xff]  ;;  %v758_v31 = vld [vmem:[#allocation14] ss:$0 sm:$0xff]  ;;  %v961_v49 = vld [vmem:[#allocation12 + $0x38] sm:$0xff]  }
  0x5e   :  { %v962_v50 = vld [vmem:[#allocation12 + $0x30] sm:$0xff]   ;;  %v963_v51 = vld [vmem:[#allocation12 + $0x28] sm:$0xff]   ;;  %v964_v52 = vld [vmem:[#allocation12 + $0x20] sm:$0xff]  }
  0x5f   :  { %865 = vmatpush3.bf16.msra.mxu1 %v939_v5  ;;  %845 = vmatpush3.bf16.msra.mxu0 %v940_v6  ;;  %v965_v53 = vld [vmem:[#allocation12 + $0x18] sm:$0xff]   ;;  %v966_v54 = vld [vmem:[#allocation12 + $0x10] sm:$0xff]   ;;  %v967_v55 = vld [vmem:[#allocation12 + $0x8] sm:$0xff]  }
  0x60   :  { %866 = vmatprep.subr.bf16.mxu1 %v1180_v0  ;;  %846 = vmatprep.subr.bf16.mxu0 %v1180_v0  ;;  %v968_v56 = vld [vmem:[#allocation12] sm:$0xff]  }
  0x63   :  { %867 = vmatpush3.bf16.msra.mxu1 %v941_v7  ;;  %847 = vmatpush3.bf16.msra.mxu0 %v942_v8 }
  0x64   :  { %868 = vmatprep.subr.bf16.mxu1 %v1180_v0  ;;  %848 = vmatprep.subr.bf16.mxu0 %v1180_v0  ;;  %v970_v29 = vpop.eup %969 }
  0x65   :  { %920 = vpush %v970_v29 }
  0x67   :  { %869 = vmatpush3.bf16.msra.mxu1 %v943_v9  ;;  %849 = vmatpush3.bf16.msra.mxu0 %v944_v10 }
  0x68   :  { %870 = vmatprep.subr.bf16.mxu1 %v1180_v0  ;;  %850 = vmatprep.subr.bf16.mxu0 %v1180_v0 }
  0x6b   :  { %871 = vmatpush3.bf16.msra.mxu1 %v945_v11  ;;  %851 = vmatpush3.bf16.msra.mxu0 %v946_v12  ;;  %v754_v11 = vld [vmem:[%s1369_s6 + $0x4] ss:$0 sm:$0xff] }
  0x6c   :  { %872 = vmatprep.subr.bf16.mxu1 %v1180_v0  ;;  %852 = vmatprep.subr.bf16.mxu0 %v1180_v0 }
  0x6f   :  { %873 = vmatpush3.bf16.msra.mxu1 %v947_v13  ;;  %853 = vmatpush3.bf16.msra.mxu0 %v948_v14 }
  0x70   :  { %874 = vmatprep.subr.bf16.mxu1 %v1180_v0  ;;  %854 = vmatprep.subr.bf16.mxu0 %v1180_v0 }
  0x73   :  { %875 = vmatpush3.bf16.msra.mxu1 %v949_v15  ;;  %855 = vmatpush3.bf16.msra.mxu0 %v951_v16  ;;  %v755_v15 = vld [vmem:[%s1369_s6 + $0x5] ss:$0 sm:$0xff] }
  0x74   :  { %900 = vmatprep.subr.bf16.mxu1 %v1180_v0  ;;  %880 = vmatprep.subr.bf16.mxu0 %v1180_v0 }
  0x76   :  { %877 = vmatmul.mubr.bf16.vlgmr.msra.gmra.mxu1 %v950_v17  ;;  %857 = vmatmul.mubr.bf16.vlgmr.msra.gmra.mxu0 %v952_v18 }
  0x77   :  { %916 = vmatprep.mubr.msk.bf16.mxu1 %vm1181_vm0, %v1180_v0  ;;  %881 = vmatpush3.bf16.msra.mxu0 %v953_v19 }
  0x78   :  { %896 = vmatprep.mubr.msk.bf16.mxu0 %vm1181_vm0, %v1180_v0  ;;  %882 = vmatprep.subr.bf16.mxu0 %v1180_v0 }
  0x79   :  { %901 = vmatpush3.bf16.msra.mxu1 %v961_v49 }
  0x7a   :  { %902 = vmatprep.subr.bf16.mxu1 %v1180_v0 }
  0x7b   :  { %883 = vmatpush3.bf16.msra.mxu0 %v954_v20 }
  0x7c   :  { %884 = vmatprep.subr.bf16.mxu0 %v1180_v0 }
  0x7d   :  { %903 = vmatpush3.bf16.msra.mxu1 %v962_v50 }
  0x7e   :  { %904 = vmatprep.subr.bf16.mxu1 %v1180_v0 }
  0x7f   :  { %885 = vmatpush3.bf16.msra.mxu0 %v955_v21 }
  0x80   :  { %886 = vmatprep.subr.bf16.mxu0 %v1180_v0 }
  0x81   :  { %905 = vmatpush3.bf16.msra.mxu1 %v963_v51 }
  0x82   :  { %906 = vmatprep.subr.bf16.mxu1 %v1180_v0 }
  0x83   :  { %887 = vmatpush3.bf16.msra.mxu0 %v956_v22 }
  0x84   :  { %888 = vmatprep.subr.bf16.mxu0 %v1180_v0 }
  0x85   :  { %907 = vmatpush3.bf16.msra.mxu1 %v964_v52 }
  0x86   :  { %908 = vmatprep.subr.bf16.mxu1 %v1180_v0 }
  0x87   :  { %889 = vmatpush3.bf16.msra.mxu0 %v957_v23 }
  0x88   :  { %890 = vmatprep.subr.bf16.mxu0 %v1180_v0 }
  0x89   :  { %909 = vmatpush3.bf16.msra.mxu1 %v965_v53 }
  0x8a   :  { %910 = vmatprep.subr.bf16.mxu1 %v1180_v0 }
  0x8b   :  { %891 = vmatpush3.bf16.msra.mxu0 %v958_v24 }
  0x8c   :  { %892 = vmatprep.subr.bf16.mxu0 %v1180_v0 }
  0x8d   :  { %911 = vmatpush3.bf16.msra.mxu1 %v966_v54 }
  0x8e   :  { %912 = vmatprep.subr.bf16.mxu1 %v1180_v0 }
  0x8f   :  { %893 = vmatpush3.bf16.msra.mxu0 %v959_v25  ;;  %v768_v25 = vld [vmem:[#allocation14 + $0x1] ss:$0 sm:$0xff] }
  0x90   :  { %894 = vmatprep.subr.bf16.mxu0 %v1180_v0 }
  0x91   :  { %913 = vmatpush3.bf16.msra.mxu1 %v967_v55 }
  0x92   :  { %914 = vmatprep.subr.bf16.mxu1 %v1180_v0 }
  0x93   :  { %895 = vmatpush3.bf16.msra.mxu0 %v960_v26 }
  0x95   :  { %915 = vmatpush3.bf16.msra.mxu1 %v968_v56 }
  0x96   :  { %s921_s3 = spop %920 }
  0x97   :  { %v1336_v19 = vstv %s921_s3 }
 0x136   :  { %v425_v32 = vpop.f32.mrf.mxu1  ;;  %v254_v33 = vpop.f32.mrf.mxu0 }
 0x137   :  { %v1317_v35 = vadd.f32 %v744_v30, %v254_v33  ;;  %v426_v36 = vadd.f32 %v758_v31, %v425_v32 }
 0x138   :  { %v878_v34 = vpop.f32.mrf.mxu1  ;;  %v858_v37 = vpop.f32.mrf.mxu0 }
 0x139   :  { %261 = vadd.xlane.f32.xlu0 %v1317_v35  ;;  %v265_v39 = vmul.f32 %v1317_v35, %v1317_v35  ;;  %v432_v44 = vmax.f32 %v426_v36, 0.0 }
 0x13a   :  { %v428_v38 = vpop.f32.mrf.mxu1  ;;  %v257_v41 = vpop.f32.mrf.mxu0 }
 0x13b   :  { %v429_v40 = vadd.f32 %v758_v31, %v428_v38  ;;  %v258_v43 = vadd.f32 %v744_v30, %v257_v41 }
 0x13c   :  { %v879_v42 = vpop.f32.mrf.mxu1  ;;  %v859_v46 = vpop.f32.mrf.mxu0 }
 0x13d   :  { %v433_v45 = vmax.f32 %v429_v40, 0.0  ;;  %267 = vadd.xlane.f32.xlu0 %v265_v39  ;;  %v266_v47 = vmul.f32 %v258_v43, %v258_v43 }
 0x13f   :  { %v434_v48 = vpack.c.bf16 %v433_v45, %v432_v44  ;;  %269 = vadd.xlane.f32.xlu1 %v266_v47 }
 0x141   :  { %897 = vmatmul.mubr.bf16.vlgmr.msra.gmra.mxu0 %v434_v48  ;;  %263 = vadd.xlane.f32.xlu0 %v258_v43 }
 0x1c2   :  { %v262_v57 = vpop.xlane.xlu0 %261 }
 0x1c3   :  { %v272_v58 = vmul.f32 0.0625, %v262_v57 }
 0x1c5   :  { %v276_v59 = vmul.f32 %v272_v58, %v272_v58  ;;  %v282_v0 = vsub.f32 %v1317_v35, %v272_v58  ;;  %v777_v35 = vld [vmem:[%s1369_s6 + $0x1] ss:$0 sm:$0xff] }
 0x1c6   :  { %v268_v60 = vpop.xlane.xlu0 %267 }
 0x1c7   :  { %v274_v61 = vmul.f32 0.0625, %v268_v60 }
 0x1c8   :  { %v270_v62 = vpop.xlane.xlu1 %269 }
 0x1c9   :  { %v278_v63 = vsub.f32 %v274_v61, %v276_v59  ;;  %v275_v4 = vmul.f32 0.0625, %v270_v62 }
 0x1ca   :  { %v264_v1 = vpop.xlane.xlu0 %263 }
 0x1cb   :  { %v280_v2 = vmax.f32 %v278_v63, 0.0  ;;  %v273_v3 = vmul.f32 0.0625, %v264_v1 }
 0x1cd   :  { %v284_v5 = vadd.f32 1e-05, %v280_v2  ;;  %v277_v6 = vmul.f32 %v273_v3, %v273_v3  ;;  %v283_v13 = vsub.f32 %v258_v43, %v273_v3 }
 0x1cf   :  { %971 = vrsqrt.f32 %v284_v5  ;;  %v279_v7 = vsub.f32 %v275_v4, %v277_v6 }
 0x1d1   :  { %v281_v8 = vmax.f32 %v279_v7, 0.0 }
 0x1d3   :  { %v285_v9 = vadd.f32 1e-05, %v281_v8 }
 0x1d5   :  { %973 = vrsqrt.f32 %v285_v9 }
 0x1dc   :  { %v972_v10 = vpop.eup %971 }
 0x1dd   :  { %v288_v12 = vmul.f32 %v972_v10, %v282_v0 }
 0x1df   :  { %v294_v14 = vmul.f32 %v754_v11, %v288_v12 }
 0x1e1   :  { %v300_v18 = vadd.f32 %v755_v15, %v294_v14 }
 0x1e2   :  { %v974_v16 = vpop.eup %973 }
 0x1e3   :  { %v289_v17 = vmul.f32 %v974_v16, %v283_v13  ;;  %v303_v22 = vmul.f32 %v1336_v19, %v300_v18 }
 0x1e5   :  { %v295_v20 = vmul.f32 %v754_v11, %v289_v17 }
 0x1e7   :  { %v301_v21 = vadd.f32 %v755_v15, %v295_v20 }
 0x1e9   :  { %v304_v23 = vmul.f32 %v1336_v19, %v301_v21 }
 0x1eb   :  { %v797_v24 = vpack.c.bf16 %v304_v23, %v303_v22 }
 0x1ed   :  { %798 = vst [vmem:[#allocation15] sm:$0xff] %v797_v24  }
 0x201   :  { %v537_v26 = vpop.f32.mrf.mxu0 }
 0x202   :  { %v538_v28 = vadd.f32 %v768_v25, %v537_v26 }
 0x203   :  { %v898_v27 = vpop.f32.mrf.mxu0 }
 0x204   :  { %v544_v32 = vmax.f32 %v538_v28, 0.0 }
 0x205   :  { %v540_v29 = vpop.f32.mrf.mxu0 }
 0x206   :  { %v541_v30 = vadd.f32 %v768_v25, %v540_v29 }
 0x207   :  { %v899_v31 = vpop.f32.mrf.mxu0 }
 0x208   :  { %v545_v33 = vmax.f32 %v541_v30, 0.0 }
 0x20a   :  { %v546_v34 = vpack.c.bf16 %v545_v33, %v544_v32 }
 0x20c   :  { %917 = vmatmul.mubr.bf16.vlgmr.msra.gmra.mxu1 %v546_v34 }
 0x2cc   :  { %v649_v36 = vpop.f32.mrf.mxu1 }
 0x2cd   :  { %v650_v37 = vadd.f32 %v777_v35, %v649_v36 }
 0x2ce   :  { %v918_v38 = vpop.f32.mrf.mxu1 }
 0x2cf   :  { %656 = vadd.xlane.f32.xlu1 %v650_v37  ;;  %v660_v39 = vmul.f32 %v650_v37, %v650_v37 }
 0x2d0   :  { %v652_v40 = vpop.f32.mrf.mxu1 }
 0x2d1   :  { %v653_v41 = vadd.f32 %v777_v35, %v652_v40  ;;  %662 = vadd.xlane.f32.xlu0 %v660_v39 }
 0x2d2   :  { %v919_v42 = vpop.f32.mrf.mxu1 }
 0x2d3   :  { %658 = vadd.xlane.f32.xlu1 %v653_v41  ;;  %v661_v43 = vmul.f32 %v653_v41, %v653_v41 }
 0x2d7   :  { %664 = vadd.xlane.f32.xlu1 %v661_v43 }
 0x2d8   :  { %1130 = shalt.err (!%p1127_p11)
}
 0x2d9   :  { %719 = dma.vmem_to_hbm [thread:$0]  %s714_s14, 128, %s1372_s9, [#allocation5], %s1173_s18, %s1173_s18, %s1174_s19  }
 0x2da   :  { %v786_v63 = vld [vmem:[%s1369_s6 + $0x2] ss:$0 sm:$0xff]  ;;  %v787_v4 = vld [vmem:[%s1369_s6 + $0x3] ss:$0 sm:$0xff]  ;;  %s1183_s21 = smov [#allocation16]  }
 0x2db   :  { %s725_s22 = sshll.u32 %s1183_s21, 4  ;;  %s726_s22 = int_to_ptr.vmem [resolvable:$true] %s725_s22 }
 0x2dc   :  { %s1139_s23 = scalar_lea.vmem %s726_s22, 128  ;;  %p1144_p13 = scmp.lt.s32.totalorder %s726_s22, %s726_s22 }
 0x2dd   :  { %p1140_p12 = scmp.ne.s32.totalorder %s726_s22, %s1139_s23  ;;  %p1145_p0 = scmp.lt.s32.totalorder %s1139_s23, %s1139_s23 }
 0x2df   :  { %p1146_p1 = por %p1145_p0, %p1144_p13 }
 0x2e1   :  { %p1147_p2 = pnand %p1146_p1, %p1140_p12 }
 0x358   :  { %v657_v44 = vpop.xlane.xlu1 %656 }
 0x359   :  { %v666_v45 = vmul.f32 0.0625, %v657_v44 }
 0x35a   :  { %v663_v46 = vpop.xlane.xlu0 %662 }
 0x35b   :  { %v670_v47 = vmul.f32 %v666_v45, %v666_v45  ;;  %v668_v48 = vmul.f32 0.0625, %v663_v46  ;;  %v676_v60 = vsub.f32 %v650_v37, %v666_v45 }
 0x35c   :  { %v659_v49 = vpop.xlane.xlu1 %658 }
 0x35d   :  { %v672_v50 = vsub.f32 %v668_v48, %v670_v47  ;;  %v667_v51 = vmul.f32 0.0625, %v659_v49 }
 0x35f   :  { %v674_v52 = vmax.f32 %v672_v50, 0.0  ;;  %v671_v55 = vmul.f32 %v667_v51, %v667_v51  ;;  %v677_v1 = vsub.f32 %v653_v41, %v667_v51 }
 0x360   :  { %v665_v53 = vpop.xlane.xlu1 %664 }
 0x361   :  { %v678_v54 = vadd.f32 1e-05, %v674_v52  ;;  %v669_v56 = vmul.f32 0.0625, %v665_v53 }
 0x363   :  { %975 = vrsqrt.f32 %v678_v54  ;;  %v673_v57 = vsub.f32 %v669_v56, %v671_v55 }
 0x365   :  { %v675_v58 = vmax.f32 %v673_v57, 0.0 }
 0x367   :  { %v679_v59 = vadd.f32 1e-05, %v675_v58 }
 0x369   :  { %977 = vrsqrt.f32 %v679_v59 }
 0x370   :  { %v976_v61 = vpop.eup %975 }
 0x371   :  { %v682_v62 = vmul.f32 %v976_v61, %v676_v60 }
 0x373   :  { %v688_v2 = vmul.f32 %v786_v63, %v682_v62 }
 0x375   :  { %v694_v7 = vadd.f32 %v787_v4, %v688_v2 }
 0x376   :  { %v978_v3 = vpop.eup %977 }
 0x377   :  { %v683_v5 = vmul.f32 %v978_v3, %v677_v1  ;;  %v696_v9 = vmul.f32 %v694_v7, %v1336_v19 }
 0x379   :  { %v689_v6 = vmul.f32 %v786_v63, %v683_v5 }
 0x37b   :  { %v695_v8 = vadd.f32 %v787_v4, %v689_v6 }
 0x37d   :  { %v697_v0 = vmul.f32 %v695_v8, %v1336_v19 }
 0x37f   :  { %v802_v10 = vpack.c.bf16 %v697_v0, %v696_v9 }
 0x381   :  { %803 = vst [vmem:[#allocation16] sm:$0xff] %v802_v10  }
 0x382   :  { %1150 = shalt.err (!%p1147_p2)
}
 0x383   :  { %731 = dma.vmem_to_hbm [thread:$0]  %s726_s22, 128, %s1373_s10, [#allocation17], %s1173_s18, %s1173_s18, %s1174_s19  }
 0x384   :  { %1167 = dma.done.wait [#allocation5], 128  }
 0x385   :  { %1168 = vsyncadd [#allocation5], 4294967168 }
 0x386   :  { %1169 = dma.done.wait [#allocation17], 128  }
 0x387   :  { %1170 = vsyncadd [#allocation17], 4294967168 }
 0x388   :  { %738 = vsyncpa [#allocation4], 1 }
 0x389   :  { %739 = vsyncpa [#allocation7], 1 }
 0x38a   :  { %740 = vsyncpa [#allocation10], 1 }
 0x38b   :  { %741 = vsyncpa [#allocation13], 1 }
 0x38c   :  { %742 = vsyncpa [#allocation5], 1 }
 0x38d   :  { %743 = vsyncpa [#allocation17], 1 }

</bundles_post_ra>
